<compile_context>
chip_gen: v5e
topology: v5e:2x2
jax: 0.10.0
libtpu: 0.0.40
codegen_flags: <defaults>
</compile_context>

<pallas_src>
import jax
import jax.numpy as jnp
import numpy as np
from jax import lax
from jax.experimental import pallas as pl
from jax.experimental.pallas import tpu as pltpu

_LANE = 128   # lane alignment for packed-slab column blocks / output padding
_SUB = 8      # sublane multiple for slab row padding


def _round_up(x, m):
    return int(-(-x // m) * m)


# ----------------------------- Pallas kernel ------------------------------ #

def _make_kernel(bn, hw, backbone_dim, latent, ncls_pos, ncls_orient,
                 use_residual, out_cols, offs):
    ncls_tot = ncls_pos + ncls_orient
    ncls_max = max(ncls_pos, ncls_orient)
    inv_hw = 1.0 / float(hw)
    off_cls, off_clsfc, off_reg = offs["cls"], offs["clsfc"], offs["reg"]
    off_cp, off_co = offs["cp"], offs["co"]

    def mxu_dot(a, w):
        # bf16 operands + f32 accumulation: native full-rate MXU path.
        return jnp.dot(a.astype(jnp.bfloat16), w,
                       preferred_element_type=jnp.float32)

    def kernel(feats_ref, wt_ref, ws_ref, out_ref):
        # ---- AdaptiveAvgPool2d(1) + flatten: sublane reduction over H*W.
        f = feats_ref[...].astype(jnp.float32)               # (bn, HW, C)
        x = jnp.sum(f, axis=1) * inv_hw                      # (bn, C)

        # ---- fc1 + ReLU (+ Dropout == identity at inference)
        w_fc1 = wt_ref[0:backbone_dim, :]
        b_fc1 = wt_ref[backbone_dim:backbone_dim + 1, :].astype(jnp.float32)
        x = jnp.maximum(mxu_dot(x, w_fc1) + b_fc1, 0.0)      # (bn, latent)

        # ---- fused classification heads: one matmul, one sigmoid.
        w_cls = ws_ref[0:latent, off_cls:off_cls + ncls_tot]
        b_cls = ws_ref[latent:latent + 1,
                       off_cls:off_cls + ncls_tot].astype(jnp.float32)
        cls = jax.nn.sigmoid(mxu_dot(x, w_cls) + b_cls)      # (bn, ncls_tot)
        cls_x = cls[:, 0:ncls_pos]
        cls_q = cls[:, ncls_pos:ncls_tot]

        # ---- fused cls_*_fc via block-diagonal weight: one matmul + ReLU.
        w_cfc = ws_ref[0:ncls_tot, off_clsfc:off_clsfc + 2 * latent]
        b_cfc = ws_ref[ncls_tot:ncls_tot + 1,
                       off_clsfc:off_clsfc + 2 * latent].astype(jnp.float32)
        lat = jnp.maximum(mxu_dot(cls, w_cfc) + b_cfc, 0.0)  # (bn, 2*latent)
        h1 = x + lat[:, 0:latent]
        h2 = h1 + lat[:, latent:2 * latent]

        # ---- regression heads: two tiny dots (no batch-axis concat repack).
        w_reg = ws_ref[0:latent, off_reg:off_reg + 7]
        b_reg = ws_ref[latent:latent + 1,
                       off_reg:off_reg + 7].astype(jnp.float32)
        p_x = mxu_dot(h1, w_reg[:, 0:3]) + b_reg[:, 0:3]     # (bn, 3)
        p_q = mxu_dot(h2, w_reg[:, 3:7]) + b_reg[:, 3:7]     # (bn, 4)

        if use_residual:
            # Shared constants for both ordinal decodes (built once).
            ri = lax.broadcasted_iota(jnp.int32, (ncls_max, ncls_max), 0)
            ci = lax.broadcasted_iota(jnp.int32, (ncls_max, ncls_max), 1)
            tri = (ri <= ci).astype(jnp.bfloat16)            # upper-triangular
            kcol = lax.broadcasted_iota(
                jnp.int32, (bn, ncls_max), 1).astype(jnp.float32)

            def onehot_label(pred, ncls):
                # label = relu(sum(cumprod(pred > 0.5, dim=1), dim=1) - 1)
                # cumprod(bool) == (cumsum(!bool) == 0); cumsum is a tiny
                # triangular matmul, the centroid gather a one-hot matmul.
                gt = (pred > 0.5).astype(jnp.float32)
                notb = (1.0 - gt).astype(jnp.bfloat16)
                csum = jnp.dot(notb, tri[0:ncls, 0:ncls],
                               preferred_element_type=jnp.float32)
                cprod = (csum < 0.5).astype(jnp.float32)
                run = jnp.sum(cprod, axis=1, keepdims=True)  # (bn, 1)
                label = jnp.maximum(run - 1.0, 0.0)
                return (jnp.abs(label - kcol[:, 0:ncls]) < 0.5
                        ).astype(jnp.bfloat16)

            cent_p = ws_ref[0:ncls_pos, off_cp:off_cp + 3]
            cent_o = ws_ref[0:ncls_orient, off_co:off_co + 4]
            p_x = p_x + jnp.dot(onehot_label(cls_x, ncls_pos), cent_p,
                                preferred_element_type=jnp.float32)
            p_q = p_q + jnp.dot(onehot_label(cls_q, ncls_orient), cent_o,
                                preferred_element_type=jnp.float32)

        # ---- assemble in registers, one lane-dense (bn, out_cols) store:
        #      [p_x | p_q | cls_x | cls_q | 0-pad]
        pad = jnp.zeros((bn, out_cols - 7 - ncls_tot), jnp.float32)
        out_ref[...] = jnp.concatenate([p_x, p_q, cls, pad], axis=1)

    return kernel


# --------------------------- parameter packing ----------------------------- #

def _pack_params(p, backbone_dim, latent, ncls_pos, ncls_orient,
                 cent_pos=None, cent_orient=None, dtype=jnp.bfloat16):
    """Pack weights + biases (+ centroids) into two bf16 slabs.

    Tall slab : (roundup(backbone_dim+1, 8), latent)   -- fc1 weight + bias row.
    Short slab: 128-lane-aligned column blocks [cls | clsfc(block-diag) | reg |
                cent_pos | cent_orient]; each block's bias sits on the row
                directly below its weight rows.  No dead rows padded to
                backbone_dim, no separate bias input.
    """
    ncls_tot = ncls_pos + ncls_orient
    use_residual = cent_pos is not None

    r_tall = _round_up(backbone_dim + 1, _SUB)
    wt = jnp.zeros((r_tall, latent), jnp.float32)
    wt = wt.at[:backbone_dim, :].set(p["w_fc1"])
    wt = wt.at[backbone_dim, :].set(p["b_fc1"].reshape(-1))

    off_cls = 0
    off_clsfc = _round_up(off_cls + ncls_tot, _LANE)
    off_reg = _round_up(off_clsfc + 2 * latent, _LANE)
    off_cp = _round_up(off_reg + 7, _LANE)
    off_co = _round_up(off_cp + 3, _LANE)
    ncols = _round_up((off_co + 4) if use_residual else (off_reg + 7), _LANE)
    r_short = _round_up(max(latent, ncls_tot) + 1, _SUB)

    ws = jnp.zeros((r_short, ncols), jnp.float32)
    # fused classification heads [pos | orient]
    ws = ws.at[:latent, off_cls:off_cls + ncls_pos].set(p["w_cls_pos"])
    ws = ws.at[:latent, off_cls + ncls_pos:off_cls + ncls_tot].set(p["w_cls_orient"])
    ws = ws.at[latent, off_cls:off_cls + ncls_pos].set(p["b_cls_pos"].reshape(-1))
    ws = ws.at[latent, off_cls + ncls_pos:off_cls + ncls_tot].set(p["b_cls_orient"].reshape(-1))
    # block-diagonal [cls_pos_fc ; cls_orient_fc]
    ws = ws.at[:ncls_pos, off_clsfc:off_clsfc + latent].set(p["w_cls_pos_fc"])
    ws = ws.at[ncls_pos:ncls_tot,
               off_clsfc + latent:off_clsfc + 2 * latent].set(p["w_cls_orient_fc"])
    ws = ws.at[ncls_tot, off_clsfc:off_clsfc + latent].set(p["b_cls_pos_fc"].reshape(-1))
    ws = ws.at[ncls_tot,
               off_clsfc + latent:off_clsfc + 2 * latent].set(p["b_cls_orient_fc"].reshape(-1))
    # regression heads [pos | orient]
    ws = ws.at[:latent, off_reg:off_reg + 3].set(p["w_reg_pos"])
    ws = ws.at[:latent, off_reg + 3:off_reg + 7].set(p["w_reg_orient"])
    ws = ws.at[latent, off_reg:off_reg + 3].set(p["b_reg_pos"].reshape(-1))
    ws = ws.at[latent, off_reg + 3:off_reg + 7].set(p["b_reg_orient"].reshape(-1))
    if use_residual:
        ws = ws.at[:ncls_pos, off_cp:off_cp + 3].set(cent_pos)
        ws = ws.at[:ncls_orient, off_co:off_co + 4].set(cent_orient)

    offs = dict(cls=off_cls, clsfc=off_clsfc, reg=off_reg, cp=off_cp, co=off_co)
    return wt.astype(dtype), ws.astype(dtype), offs


# ------------------------------- wrapper ----------------------------------- #

def ordiposenet_forward(feats_nchw, params, cent_pos=None, cent_orient=None,
                        use_residual=False, block_n=8):
    N, C, H, W = feats_nchw.shape
    hw = H * W
    latent = params["w_fc1"].shape[1]
    ncls_pos = params["w_cls_pos"].shape[1]
    ncls_orient = params["w_cls_orient"].shape[1]
    ncls_tot = ncls_pos + ncls_orient
    out_cols = _round_up(7 + ncls_tot, _LANE)

    # Channels on lanes: (N, H*W, C), bf16 — dense feats DMA, in-kernel pool
    # becomes a sublane reduction.
    feats = jnp.transpose(feats_nchw, (0, 2, 3, 1)).reshape(N, hw, C)
    feats = feats.astype(jnp.bfloat16)

    bn = min(block_n, N)
    n_pad = (-N) % bn
    if n_pad:
        feats = jnp.pad(feats, ((0, n_pad), (0, 0), (0, 0)))
    n_padded = N + n_pad

    wt, ws, offs = _pack_params(
        params, C, latent, ncls_pos, ncls_orient,
        cent_pos if use_residual else None,
        cent_orient if use_residual else None)

    kernel = _make_kernel(bn, hw, C, latent, ncls_pos, ncls_orient,
                          use_residual, out_cols, offs)

    flops = int(2 * n_padded * (C * latent + latent * ncls_tot
                                + ncls_tot * 2 * latent + latent * 7)
                + n_padded * hw * C)
    if use_residual:
        flops += int(2 * n_padded * (ncls_pos * ncls_pos + ncls_orient * ncls_orient
                                     + ncls_pos * 3 + ncls_orient * 4))
    bytes_accessed = int(2 * feats.size + 2 * (wt.size + ws.size)
                         + 4 * n_padded * out_cols)

    out = pl.pallas_call(
        kernel,
        out_shape=jax.ShapeDtypeStruct((n_padded, out_cols), jnp.float32),
        grid=(n_padded // bn,),
        in_specs=[
            pl.BlockSpec((bn, hw, C), lambda i: (i, 0, 0)),      # feats: tiled over N
            pl.BlockSpec(wt.shape, lambda i: (0, 0)),            # fc1 slab: resident
            pl.BlockSpec(ws.shape, lambda i: (0, 0)),            # short slab: resident
        ],
        out_specs=pl.BlockSpec((bn, out_cols), lambda i: (i, 0)),
        compiler_params=pltpu.CompilerParams(
            dimension_semantics=("parallel",),
            vmem_limit_bytes=32 * 1024 * 1024),
        cost_estimate=pl.CostEstimate(flops=flops,
                                      transcendentals=int(n_padded * ncls_tot),
                                      bytes_accessed=bytes_accessed),
    )(feats, wt, ws)

    out = out[:N]
    pose = out[:, 0:7]                              # [p_x | p_q], residual applied in-kernel
    cls_x = out[:, 7:7 + ncls_pos]
    cls_q = out[:, 7 + ncls_pos:7 + ncls_tot]
    pose_cls = jnp.stack((cls_x, cls_q), axis=2)    # (N, ncls, 2) -- needs ncls_pos==ncls_orient
    return {"pose": pose, "pose_cls": pose_cls}


# -------------------------- deterministic params --------------------------- #

def _linear_params(key, fan_in, fan_out):
    kw, kb = jax.random.split(key)
    # kaiming_normal_: std = sqrt(2 / fan_in); bias: torch Linear default.
    w = jax.random.normal(kw, (fan_in, fan_out), jnp.float32) * np.sqrt(2.0 / fan_in)
    bound = 1.0 / np.sqrt(fan_in)
    b = jax.random.uniform(kb, (1, fan_out), jnp.float32, -bound, bound)
    return w, b


def init_params(key, backbone_dim, latent_dim, ncls_pos, ncls_orient):
    keys = jax.random.split(key, 7)
    p = {}
    p["w_fc1"], p["b_fc1"] = _linear_params(keys[0], backbone_dim, latent_dim)
    p["w_cls_pos"], p["b_cls_pos"] = _linear_params(keys[1], latent_dim, ncls_pos)
    p["w_cls_orient"], p["b_cls_orient"] = _linear_params(keys[2], latent_dim, ncls_orient)
    p["w_cls_pos_fc"], p["b_cls_pos_fc"] = _linear_params(keys[3], ncls_pos, latent_dim)
    p["w_cls_orient_fc"], p["b_cls_orient_fc"] = _linear_params(keys[4], ncls_orient, latent_dim)
    p["w_reg_pos"], p["b_reg_pos"] = _linear_params(keys[5], latent_dim, 3)
    p["w_reg_orient"], p["b_reg_orient"] = _linear_params(keys[6], latent_dim, 4)
    return p


# ------------------------------ reference ---------------------------------- #

def _convert_pred_to_label(pred):
    # label = relu(sum(cumprod(pred > 0.5, dim=1), dim=1) - 1)
    lab = jnp.sum(jnp.cumprod((pred > 0.5).astype(jnp.int32), axis=1), axis=1) - 1
    return jnp.maximum(lab, 0).astype(jnp.int32)


def reference_forward(feats_nchw, p, cent_pos, cent_orient, use_residual):
    """Module forward in eval mode with the same bf16 operand quantization the
    kernel uses (weights/biases/activations rounded to bf16 at each MXU input,
    f32 accumulation)."""
    bf = jnp.bfloat16

    def d(a, w):
        return jnp.dot(a.astype(bf), w.astype(bf),
                       preferred_element_type=jnp.float32)

    def q(b):
        return b.astype(bf).astype(jnp.float32)

    x = jnp.mean(feats_nchw.astype(bf).astype(jnp.float32), axis=(2, 3))
    x = jnp.maximum(d(x, p["w_fc1"]) + q(p["b_fc1"]), 0.0)
    cls_x = jax.nn.sigmoid(d(x, p["w_cls_pos"]) + q(p["b_cls_pos"]))
    cls_q = jax.nn.sigmoid(d(x, p["w_cls_orient"]) + q(p["b_cls_orient"]))
    cls_x_lat = jnp.maximum(d(cls_x, p["w_cls_pos_fc"]) + q(p["b_cls_pos_fc"]), 0.0)
    cls_q_lat = jnp.maximum(d(cls_q, p["w_cls_orient_fc"]) + q(p["b_cls_orient_fc"]), 0.0)
    h1 = x + cls_x_lat
    h2 = h1 + cls_q_lat
    p_x = d(h1, p["w_reg_pos"]) + q(p["b_reg_pos"])
    p_q = d(h2, p["w_reg_orient"]) + q(p["b_reg_orient"])
    if use_residual:
        p_x = p_x + q(cent_pos)[_convert_pred_to_label(cls_x)]
        p_q = p_q + q(cent_orient)[_convert_pred_to_label(cls_q)]
    return {"pose": jnp.concatenate((p_x, p_q), axis=1),
            "pose_cls": jnp.stack((cls_x, cls_q), axis=2)}


# --------------------------------- main ------------------------------------ #

if __name__ == "__main__":
    key = jax.random.PRNGKey(0)
    k_feat, k_param, k_cpos, k_cor = jax.random.split(key, 4)

    # Small config consistent with the module's __init__:
    N, backbone_dim, H, W = 2, 32, 4, 4
    latent_dim = 32
    num_classes_pos = num_classes_orient = 8   # equal so torch.stack(dim=2) is valid
    use_residual = True

    feats = jax.random.normal(k_feat, (N, backbone_dim, H, W), jnp.float32)
    params = init_params(k_param, backbone_dim, latent_dim,
                         num_classes_pos, num_classes_orient)
    cent_pos = jax.random.normal(k_cpos, (num_classes_pos, 3), jnp.float32)
    cent_orient = jax.random.normal(k_cor, (num_classes_orient, 4), jnp.float32)

    out = ordiposenet_forward(feats, params, cent_pos, cent_orient,
                              use_residual=use_residual)
    out = jax.block_until_ready(out)

    ref = reference_forward(feats, params, cent_pos, cent_orient, use_residual)
    np.testing.assert_allclose(np.asarray(out["pose"]), np.asarray(ref["pose"]),
                               rtol=2e-2, atol=2e-2)
    np.testing.assert_allclose(np.asarray(out["pose_cls"]),
                               np.asarray(ref["pose_cls"]), rtol=2e-2, atol=2e-2)

    assert out["pose"].shape == (N, 7)
    assert out["pose_cls"].shape == (N, num_classes_pos, 2)
    print("KERNEL_OK")
</pallas_src>

<mosaic_0001>
module attributes {stable_mosaic.version = 11 : i64} {
  func.func @kernel(%arg0: i32, %arg1: memref<2x16x32xbf16, #tpu.memory_space<vmem>>, %arg2: memref<40x32xbf16, #tpu.memory_space<vmem>>, %arg3: memref<40x640xbf16, #tpu.memory_space<vmem>>, %arg4: memref<2x128xf32, #tpu.memory_space<vmem>>) attributes {dimension_semantics = [#tpu.dimension_semantics<parallel>], iteration_bounds = array<i64: 1>, scalar_prefetch = 0 : i64, scratch_operands = 0 : i64, tpu.core_type = #tpu.core_type<tc>, window_params = [{transform_indices = @transform_0, window_bounds = array<i64: 2, 16, 32>}, {pipeline_mode = #tpu.pipeline_mode<synchronous>, transform_indices = @transform_1, window_bounds = array<i64: 40, 32>}, {pipeline_mode = #tpu.pipeline_mode<synchronous>, transform_indices = @transform_2, window_bounds = array<i64: 40, 640>}, {transform_indices = @transform_3, window_bounds = array<i64: 2, 128>}]} {
    %c0 = arith.constant 0 : index
    %c0_0 = arith.constant 0 : index
    %c0_1 = arith.constant 0 : index
    %0 = vector.load %arg1[%c0, %c0_0, %c0_1] : memref<2x16x32xbf16, #tpu.memory_space<vmem>>, vector<2x16x32xbf16>
    %1 = arith.extf %0 : vector<2x16x32xbf16> to vector<2x16x32xf32>
    %cst = arith.constant dense<0.000000e+00> : vector<2x32xf32>
    %2 = vector.multi_reduction <add>, %1, %cst [1] : vector<2x16x32xf32> to vector<2x32xf32>
    %cst_2 = arith.constant 6.250000e-02 : f32
    %3 = vector.broadcast %cst_2 : f32 to vector<2x32xf32>
    %4 = arith.mulf %2, %3 : vector<2x32xf32>
    %c0_3 = arith.constant 0 : index
    %c0_4 = arith.constant 0 : index
    %5 = vector.load %arg2[%c0_3, %c0_4] : memref<40x32xbf16, #tpu.memory_space<vmem>>, vector<32x32xbf16>
    %c32 = arith.constant 32 : index
    %c0_5 = arith.constant 0 : index
    %6 = vector.load %arg2[%c32, %c0_5] : memref<40x32xbf16, #tpu.memory_space<vmem>>, vector<1x32xbf16>
    %7 = arith.extf %6 : vector<1x32xbf16> to vector<1x32xf32>
    %8 = arith.truncf %4 : vector<2x32xf32> to vector<2x32xbf16>
    %cst_6 = arith.constant dense<0.000000e+00> : vector<2x32xf32>
    %9 = tpu.matmul %8, %5, %cst_6 {dimension_numbers = #tpu.dot_dimension_numbers<[1], [0], [0], [1], [0, 0, 1, 1], [], []>} : vector<2x32xbf16>, vector<32x32xbf16>, vector<2x32xf32> -> vector<2x32xf32>
    %10 = vector.broadcast %7 : vector<1x32xf32> to vector<2x32xf32>
    %11 = arith.addf %9, %10 : vector<2x32xf32>
    %cst_7 = arith.constant 0.000000e+00 : f32
    %12 = vector.broadcast %cst_7 : f32 to vector<2x32xf32>
    %13 = arith.maximumf %11, %12 : vector<2x32xf32>
    %c0_8 = arith.constant 0 : index
    %c0_9 = arith.constant 0 : index
    %14 = vector.load %arg3[%c0_8, %c0_9] : memref<40x640xbf16, #tpu.memory_space<vmem>>, vector<32x16xbf16>
    %c32_10 = arith.constant 32 : index
    %c0_11 = arith.constant 0 : index
    %15 = vector.load %arg3[%c32_10, %c0_11] : memref<40x640xbf16, #tpu.memory_space<vmem>>, vector<1x16xbf16>
    %16 = arith.extf %15 : vector<1x16xbf16> to vector<1x16xf32>
    %17 = arith.truncf %13 : vector<2x32xf32> to vector<2x32xbf16>
    %cst_12 = arith.constant dense<0.000000e+00> : vector<2x16xf32>
    %18 = tpu.matmul %17, %14, %cst_12 {dimension_numbers = #tpu.dot_dimension_numbers<[1], [0], [0], [1], [0, 0, 1, 1], [], []>} : vector<2x32xbf16>, vector<32x16xbf16>, vector<2x16xf32> -> vector<2x16xf32>
    %19 = vector.broadcast %16 : vector<1x16xf32> to vector<2x16xf32>
    %20 = arith.addf %18, %19 : vector<2x16xf32>
    %21 = arith.negf %20 : vector<2x16xf32>
    %22 = math.exp %21 : vector<2x16xf32>
    %cst_13 = arith.constant 1.000000e+00 : f32
    %23 = vector.broadcast %cst_13 : f32 to vector<2x16xf32>
    %24 = arith.addf %23, %22 : vector<2x16xf32>
    %25 = arith.divf %23, %24 : vector<2x16xf32>
    %26 = vector.extract_strided_slice %25 {offsets = [0, 0], sizes = [2, 8], strides = [1, 1]} : vector<2x16xf32> to vector<2x8xf32>
    %27 = vector.extract_strided_slice %25 {offsets = [0, 8], sizes = [2, 8], strides = [1, 1]} : vector<2x16xf32> to vector<2x8xf32>
    %c0_14 = arith.constant 0 : index
    %c128 = arith.constant 128 : index
    %28 = vector.load %arg3[%c0_14, %c128] : memref<40x640xbf16, #tpu.memory_space<vmem>>, vector<16x64xbf16>
    %c16 = arith.constant 16 : index
    %c128_15 = arith.constant 128 : index
    %29 = vector.load %arg3[%c16, %c128_15] : memref<40x640xbf16, #tpu.memory_space<vmem>>, vector<1x64xbf16>
    %30 = arith.extf %29 : vector<1x64xbf16> to vector<1x64xf32>
    %31 = arith.truncf %25 : vector<2x16xf32> to vector<2x16xbf16>
    %cst_16 = arith.constant dense<0.000000e+00> : vector<2x64xf32>
    %32 = tpu.matmul %31, %28, %cst_16 {dimension_numbers = #tpu.dot_dimension_numbers<[1], [0], [0], [1], [0, 0, 1, 1], [], []>} : vector<2x16xbf16>, vector<16x64xbf16>, vector<2x64xf32> -> vector<2x64xf32>
    %33 = vector.broadcast %30 : vector<1x64xf32> to vector<2x64xf32>
    %34 = arith.addf %32, %33 : vector<2x64xf32>
    %cst_17 = arith.constant 0.000000e+00 : f32
    %35 = vector.broadcast %cst_17 : f32 to vector<2x64xf32>
    %36 = arith.maximumf %34, %35 : vector<2x64xf32>
    %37 = vector.extract_strided_slice %36 {offsets = [0, 0], sizes = [2, 32], strides = [1, 1]} : vector<2x64xf32> to vector<2x32xf32>
    %38 = arith.addf %13, %37 : vector<2x32xf32>
    %39 = vector.extract_strided_slice %36 {offsets = [0, 32], sizes = [2, 32], strides = [1, 1]} : vector<2x64xf32> to vector<2x32xf32>
    %40 = arith.addf %38, %39 : vector<2x32xf32>
    %c0_18 = arith.constant 0 : index
    %c256 = arith.constant 256 : index
    %41 = vector.load %arg3[%c0_18, %c256] : memref<40x640xbf16, #tpu.memory_space<vmem>>, vector<32x7xbf16>
    %c32_19 = arith.constant 32 : index
    %c256_20 = arith.constant 256 : index
    %42 = vector.load %arg3[%c32_19, %c256_20] : memref<40x640xbf16, #tpu.memory_space<vmem>>, vector<1x7xbf16>
    %43 = arith.extf %42 : vector<1x7xbf16> to vector<1x7xf32>
    %44 = vector.extract_strided_slice %41 {offsets = [0, 0], sizes = [32, 3], strides = [1, 1]} : vector<32x7xbf16> to vector<32x3xbf16>
    %45 = arith.truncf %38 : vector<2x32xf32> to vector<2x32xbf16>
    %cst_21 = arith.constant dense<0.000000e+00> : vector<2x3xf32>
    %46 = tpu.matmul %45, %44, %cst_21 {dimension_numbers = #tpu.dot_dimension_numbers<[1], [0], [0], [1], [0, 0, 1, 1], [], []>} : vector<2x32xbf16>, vector<32x3xbf16>, vector<2x3xf32> -> vector<2x3xf32>
    %47 = vector.extract_strided_slice %43 {offsets = [0, 0], sizes = [1, 3], strides = [1, 1]} : vector<1x7xf32> to vector<1x3xf32>
    %48 = vector.broadcast %47 : vector<1x3xf32> to vector<2x3xf32>
    %49 = arith.addf %46, %48 : vector<2x3xf32>
    %50 = vector.extract_strided_slice %41 {offsets = [0, 3], sizes = [32, 4], strides = [1, 1]} : vector<32x7xbf16> to vector<32x4xbf16>
    %51 = arith.truncf %40 : vector<2x32xf32> to vector<2x32xbf16>
    %cst_22 = arith.constant dense<0.000000e+00> : vector<2x4xf32>
    %52 = tpu.matmul %51, %50, %cst_22 {dimension_numbers = #tpu.dot_dimension_numbers<[1], [0], [0], [1], [0, 0, 1, 1], [], []>} : vector<2x32xbf16>, vector<32x4xbf16>, vector<2x4xf32> -> vector<2x4xf32>
    %53 = vector.extract_strided_slice %43 {offsets = [0, 3], sizes = [1, 4], strides = [1, 1]} : vector<1x7xf32> to vector<1x4xf32>
    %54 = vector.broadcast %53 : vector<1x4xf32> to vector<2x4xf32>
    %55 = arith.addf %52, %54 : vector<2x4xf32>
    %56 = tpu.iota {dimensions = array<i32: 0>} : vector<8x8xi32>
    %57 = tpu.iota {dimensions = array<i32: 1>} : vector<8x8xi32>
    %58 = arith.cmpi sle, %56, %57 : vector<8x8xi32>
    %59 = arith.extui %58 : vector<8x8xi1> to vector<8x8xi32>
    %60 = arith.sitofp %59 : vector<8x8xi32> to vector<8x8xf32>
    %61 = arith.truncf %60 : vector<8x8xf32> to vector<8x8xbf16>
    %62 = tpu.iota {dimensions = array<i32: 1>} : vector<2x8xi32>
    %63 = arith.sitofp %62 : vector<2x8xi32> to vector<2x8xf32>
    %c0_23 = arith.constant 0 : index
    %c384 = arith.constant 384 : index
    %64 = vector.load %arg3[%c0_23, %c384] : memref<40x640xbf16, #tpu.memory_space<vmem>>, vector<8x3xbf16>
    %c0_24 = arith.constant 0 : index
    %c512 = arith.constant 512 : index
    %65 = vector.load %arg3[%c0_24, %c512] : memref<40x640xbf16, #tpu.memory_space<vmem>>, vector<8x4xbf16>
    %cst_25 = arith.constant 5.000000e-01 : f32
    %66 = vector.broadcast %cst_25 : f32 to vector<2x8xf32>
    %67 = arith.cmpf ogt, %26, %66 : vector<2x8xf32>
    %68 = arith.extui %67 : vector<2x8xi1> to vector<2x8xi32>
    %69 = arith.sitofp %68 : vector<2x8xi32> to vector<2x8xf32>
    %cst_26 = arith.constant 1.000000e+00 : f32
    %70 = vector.broadcast %cst_26 : f32 to vector<2x8xf32>
    %71 = arith.subf %70, %69 : vector<2x8xf32>
    %72 = arith.truncf %71 : vector<2x8xf32> to vector<2x8xbf16>
    %cst_27 = arith.constant dense<0.000000e+00> : vector<2x8xf32>
    %73 = tpu.matmul %72, %61, %cst_27 {dimension_numbers = #tpu.dot_dimension_numbers<[1], [0], [0], [1], [0, 0, 1, 1], [], []>} : vector<2x8xbf16>, vector<8x8xbf16>, vector<2x8xf32> -> vector<2x8xf32>
    %cst_28 = arith.constant 5.000000e-01 : f32
    %74 = vector.broadcast %cst_28 : f32 to vector<2x8xf32>
    %75 = arith.cmpf olt, %73, %74 : vector<2x8xf32>
    %76 = arith.extui %75 : vector<2x8xi1> to vector<2x8xi32>
    %77 = arith.sitofp %76 : vector<2x8xi32> to vector<2x8xf32>
    %cst_29 = arith.constant dense<0.000000e+00> : vector<2xf32>
    %78 = vector.multi_reduction <add>, %77, %cst_29 [1] : vector<2x8xf32> to vector<2xf32>
    %79 = vector.shape_cast %78 : vector<2xf32> to vector<2x1xf32>
    %cst_30 = arith.constant 1.000000e+00 : f32
    %80 = vector.broadcast %cst_30 : f32 to vector<2x1xf32>
    %81 = arith.subf %79, %80 : vector<2x1xf32>
    %cst_31 = arith.constant 0.000000e+00 : f32
    %82 = vector.broadcast %cst_31 : f32 to vector<2x1xf32>
    %83 = arith.maximumf %81, %82 : vector<2x1xf32>
    %84 = vector.broadcast %83 : vector<2x1xf32> to vector<2x8xf32>
    %85 = arith.subf %84, %63 : vector<2x8xf32>
    %86 = math.absf %85 : vector<2x8xf32>
    %cst_32 = arith.constant 5.000000e-01 : f32
    %87 = vector.broadcast %cst_32 : f32 to vector<2x8xf32>
    %88 = arith.cmpf olt, %86, %87 : vector<2x8xf32>
    %89 = arith.extui %88 : vector<2x8xi1> to vector<2x8xi32>
    %90 = arith.sitofp %89 : vector<2x8xi32> to vector<2x8xf32>
    %91 = arith.truncf %90 : vector<2x8xf32> to vector<2x8xbf16>
    %cst_33 = arith.constant dense<0.000000e+00> : vector<2x3xf32>
    %92 = tpu.matmul %91, %64, %cst_33 {dimension_numbers = #tpu.dot_dimension_numbers<[1], [0], [0], [1], [0, 0, 1, 1], [], []>} : vector<2x8xbf16>, vector<8x3xbf16>, vector<2x3xf32> -> vector<2x3xf32>
    %93 = arith.addf %49, %92 : vector<2x3xf32>
    %cst_34 = arith.constant 5.000000e-01 : f32
    %94 = vector.broadcast %cst_34 : f32 to vector<2x8xf32>
    %95 = arith.cmpf ogt, %27, %94 : vector<2x8xf32>
    %96 = arith.extui %95 : vector<2x8xi1> to vector<2x8xi32>
    %97 = arith.sitofp %96 : vector<2x8xi32> to vector<2x8xf32>
    %cst_35 = arith.constant 1.000000e+00 : f32
    %98 = vector.broadcast %cst_35 : f32 to vector<2x8xf32>
    %99 = arith.subf %98, %97 : vector<2x8xf32>
    %100 = arith.truncf %99 : vector<2x8xf32> to vector<2x8xbf16>
    %cst_36 = arith.constant dense<0.000000e+00> : vector<2x8xf32>
    %101 = tpu.matmul %100, %61, %cst_36 {dimension_numbers = #tpu.dot_dimension_numbers<[1], [0], [0], [1], [0, 0, 1, 1], [], []>} : vector<2x8xbf16>, vector<8x8xbf16>, vector<2x8xf32> -> vector<2x8xf32>
    %cst_37 = arith.constant 5.000000e-01 : f32
    %102 = vector.broadcast %cst_37 : f32 to vector<2x8xf32>
    %103 = arith.cmpf olt, %101, %102 : vector<2x8xf32>
    %104 = arith.extui %103 : vector<2x8xi1> to vector<2x8xi32>
    %105 = arith.sitofp %104 : vector<2x8xi32> to vector<2x8xf32>
    %cst_38 = arith.constant dense<0.000000e+00> : vector<2xf32>
    %106 = vector.multi_reduction <add>, %105, %cst_38 [1] : vector<2x8xf32> to vector<2xf32>
    %107 = vector.shape_cast %106 : vector<2xf32> to vector<2x1xf32>
    %cst_39 = arith.constant 1.000000e+00 : f32
    %108 = vector.broadcast %cst_39 : f32 to vector<2x1xf32>
    %109 = arith.subf %107, %108 : vector<2x1xf32>
    %cst_40 = arith.constant 0.000000e+00 : f32
    %110 = vector.broadcast %cst_40 : f32 to vector<2x1xf32>
    %111 = arith.maximumf %109, %110 : vector<2x1xf32>
    %112 = vector.broadcast %111 : vector<2x1xf32> to vector<2x8xf32>
    %113 = arith.subf %112, %63 : vector<2x8xf32>
    %114 = math.absf %113 : vector<2x8xf32>
    %cst_41 = arith.constant 5.000000e-01 : f32
    %115 = vector.broadcast %cst_41 : f32 to vector<2x8xf32>
    %116 = arith.cmpf olt, %114, %115 : vector<2x8xf32>
    %117 = arith.extui %116 : vector<2x8xi1> to vector<2x8xi32>
    %118 = arith.sitofp %117 : vector<2x8xi32> to vector<2x8xf32>
    %119 = arith.truncf %118 : vector<2x8xf32> to vector<2x8xbf16>
    %cst_42 = arith.constant dense<0.000000e+00> : vector<2x4xf32>
    %120 = tpu.matmul %119, %65, %cst_42 {dimension_numbers = #tpu.dot_dimension_numbers<[1], [0], [0], [1], [0, 0, 1, 1], [], []>} : vector<2x8xbf16>, vector<8x4xbf16>, vector<2x4xf32> -> vector<2x4xf32>
    %121 = arith.addf %55, %120 : vector<2x4xf32>
    %cst_43 = arith.constant 0.000000e+00 : f32
    %122 = vector.broadcast %cst_43 : f32 to vector<2x105xf32>
    %123 = tpu.concatenate %93, %121, %25, %122 in 1 : vector<2x3xf32>, vector<2x4xf32>, vector<2x16xf32>, vector<2x105xf32> -> vector<2x128xf32>
    %c0_44 = arith.constant 0 : index
    %c0_45 = arith.constant 0 : index
    %124 = vector.load %arg4[%c0_44, %c0_45] : memref<2x128xf32, #tpu.memory_space<vmem>>, vector<2x128xf32>
    tpu.vector_store %arg4[%c0_44, %c0_45], %123 {strides = array<i32>} : memref<2x128xf32, #tpu.memory_space<vmem>>, vector<2x128xf32>,
    return
  }
  func.func @transform_0(%arg0: i32) -> (i32, i32, i32) {
    %c0_i32 = arith.constant 0 : i32
    %c0_i32_0 = arith.constant 0 : i32
    %c0_i32_1 = arith.constant 0 : i32
    return %arg0, %c0_i32, %c0_i32_0 : i32, i32, i32
  }
  func.func @transform_1(%arg0: i32) -> (i32, i32) {
    %c0_i32 = arith.constant 0 : i32
    %c0_i32_0 = arith.constant 0 : i32
    %c0_i32_1 = arith.constant 0 : i32
    return %c0_i32, %c0_i32_0 : i32, i32
  }
  func.func @transform_2(%arg0: i32) -> (i32, i32) {
    %c0_i32 = arith.constant 0 : i32
    %c0_i32_0 = arith.constant 0 : i32
    %c0_i32_1 = arith.constant 0 : i32
    return %c0_i32, %c0_i32_0 : i32, i32
  }
  func.func @transform_3(%arg0: i32) -> (i32, i32) {
    %c0_i32 = arith.constant 0 : i32
    %c0_i32_0 = arith.constant 0 : i32
    return %arg0, %c0_i32 : i32, i32
  }
}

</mosaic_0001>

<bundles_post_ra>
// kernel: tpu_custom_call.1
= control target key start
LH: loop header
LB: loop body
LE: loop exit
PB: predicated region body
PF: predicated region fallthrough
CT: control target
= control target key end

     0   :  { %8 = vsyncpa [#allocation3], 0  ;;  %s632_s0 = inlined_call_operand.vmem [shape: bf16[2,16,32], index: 0, kind: input, shape index: {}]   ;;  %s633_s1 = inlined_call_operand.vmem [shape: bf16[40,32], index: 1, kind: input, shape index: {}]   ;;  %s634_s2 = inlined_call_operand.hbm [shape: bf16[40,640], index: 2, kind: input, shape index: {}]   ;;  %s635_s3 = inlined_call_operand.hbm [shape: f32[2,128], index: 3, kind: output, shape index: {}]  }
   0x1   :  { %9 = vsyncpa [#allocation4], 0  ;;  %s18_s14 = sshll.u32 %s634_s2, 4  ;;  %s545_s15 = smov [#allocation2]   ;;  %s19_s14 = int_to_ptr.hbm [resolvable:$true] %s18_s14 }
   0x2   :  { %s20_s16 = sshll.u32 %s545_s15, 4  ;;  %s546_s17 = smov 320   ;;  %s21_s16 = int_to_ptr.vmem [resolvable:$true] %s20_s16 }
   0x3   :  { %s547_s18 = smov 20  }
   0x4   :  { %26 = dma.hbm_to_vmem [thread:$0]  %s19_s14, 1600, %s21_s16, [#allocation3], %s546_s17, %s546_s17, %s547_s18  }
   0x5   :  { %541 = dma.done.wait [#allocation3], 1600  }
   0x6   :  { %542 = vsyncadd [#allocation3], 4294965696  ;;  %v464_v0 = vld [vmem:[%s633_s1 + $0x8] sm:$0xff]  ;;  %v471_v1 = vld [vmem:[%s632_s0] sm:$0xff]   ;;  %vm40_vm0 = vcmask 261120   ;;  %vm74_vm1 = vcmask 1041409   ;;  %v260_v53 = vlaneseq }
   0x7   :  { %v472_v2 = vunpack.c.l.bf16 %v471_v1  ;;  %v473_v3 = vunpack.c.h.bf16 %v471_v1  ;;  %v478_v4 = vld [vmem:[%s632_s0 + $0x8] sm:$0xff]   ;;  %98 = vmatpush.bf16.msra.mxu0 %v464_v0  ;;  %v463_v5 = vld [vmem:[%s633_s1] sm:$0xff]  ;;  %v466_v35 = vld [vmem:[#allocation2 + $0x38] sm:$0xf0]  ;;  %v548_v57 = vmov 0.0   ;;  %vm280_vm3 = vcmask 1043456  }
   0x8   :  { %v476_v6 = vunpack.c.l.bf16 %v478_v4  ;;  %v477_v7 = vunpack.c.h.bf16 %v478_v4  ;;  %v432_v34 = vld [vmem:[#allocation2 + $0x28] sm:$0xf]  ;;  %v428_v37 = vld [vmem:[#allocation2] sm:$0xf]  ;;  %v465_v38 = vld [vmem:[#allocation2 + $0x10] sm:$0xf0] }
   0x9   :  { %v41_v8 = vsel %vm40_vm0, %v472_v2, 0.0  ;;  %v42_v9 = vsel %vm40_vm0, %v473_v3, 0.0  ;;  %v433_v36 = vor.u32 %v466_v35, %v432_v34  ;;  %v429_v39 = vor.u32 %v465_v38, %v428_v37  ;;  %v65_v40 = vld [vmem:[%s633_s1 + $0x10] sm:$0x1]  ;;  %v438_v49 = vld [vmem:[#allocation2 + $0x4] sm:$0xf] }
   0xa   :  { %v43_v10 = vadd.f32 %v42_v9, %v41_v8  ;;  %v50_v11 = vsel %vm40_vm0, %v476_v6, 0.0  ;;  %v51_v12 = vsel %vm40_vm0, %v477_v7, 0.0  ;;  %v66_v41 = vunpack.c.l.bf16 %v65_v40  ;;  %v110_v48 = vld [vmem:[#allocation2 + $0x50] sm:$0x1]  ;;  %v467_v50 = vld [vmem:[#allocation2 + $0x14] sm:$0xf0] }
   0xb   :  { %v52_v13 = vadd.f32 %v51_v12, %v50_v11  ;;  %99 = vmatpush.bf16.msra.mxu0 %v463_v5  ;;  %135 = vmatpush.bf16.msra.mxu1 %v433_v36  ;;  %v439_v51 = vor.u32 %v467_v50, %v438_v49  ;;  %v111_v52 = vunpack.c.l.bf16 %v110_v48  ;;  %v261_v54 = vshrl.u32 %v260_v53, 7  ;;  %s549_s1 = smov 120   ;;  %s550_s27 = smov 125   ;;  %v201_v36 = vld [vmem:[#allocation2 + $0x58] sm:$0x1] }
   0xc   :  { %v44_v14 = vrot.slane %v43_v10, 4  ;;  %v69_v42 = vperm.slane %v66_v41, 0  ;;  %v603_v55 = vand.u32 127, %v260_v53  ;;  %vm173_vm8 = vcmask 130048   ;;  %s551_s28 = smov 96   ;;  %s552_s29 = smov 7  }
   0xd   :  { %v53_v15 = vrot.slane %v52_v13, 4  ;;  %184 = vmatpush.bf16.msra.mxu2 %v439_v51  ;;  %v113_v56 = vperm.slane %v111_v52, 0  ;;  %vm276_vm10 = vcmask 64512   ;;  %v202_v37 = vunpack.c.l.bf16 %v201_v36  ;;  %v270_v52 = vld [vmem:[#allocation2 + $0x10] sm:$0xf]  ;;  %s553_s30 = smov 3  }
   0xe   :  { %v45_v16 = vadd.f32 %v44_v14, %v43_v10  ;;  %vm264_vm2 = vcmp.le.s32.totalorder %v261_v54, %v603_v55  ;;  %vm300_vm12 = vcmask 58368   ;;  %v369_v53 = vsel %vm280_vm3, %v270_v52, 0  ;;  %v269_v54 = vld [vmem:[#allocation2 + $0xc] sm:$0xf]  ;;  %s554_s4 = smov [#allocation5]   ;;  %s407_s8 = sshll.u32 %s635_s3, 4  ;;  %s408_s8 = int_to_ptr.hbm [resolvable:$true] %s407_s8 }
   0xf   :  { %v54_v17 = vadd.f32 %v53_v15, %v52_v13  ;;  %136 = vmatpush.bf16.msra.mxu1 %v429_v39  ;;  %v451_v58 = vsel %vm264_vm2, 1.0, %v548_v57  ;;  %v204_v38 = vperm.slane %v202_v37, 0  ;;  %s405_s5 = sshll.u32 %s554_s4, 4  ;;  %vm397_vm2 = vcmask 187392   ;;  %s406_s5 = int_to_ptr.vmem [resolvable:$true] %s405_s5 }
  0x10   :  { %v46_v18 = vrot.slane %v45_v16, 2  ;;  %v267_v59 = vpack.c.bf16 %v451_v58, %v451_v58 }
  0x11   :  { %v55_v19 = vrot.slane %v54_v17, 2 }
  0x12   :  { %v47_v20 = vadd.f32 %v46_v18, %v45_v16  ;;  %v282_v62 = vsel %vm280_vm3, %v267_v59, 0  ;;  %v469_v18 = vld [vmem:[#allocation2 + $0x40] sm:$0xf0] }
  0x13   :  { %v56_v21 = vadd.f32 %v55_v19, %v54_v17  ;;  %291 = vmatpush.bf16.msrb.mxu0 %v282_v62  ;;  %v447_v17 = vld [vmem:[#allocation2 + $0x30] sm:$0xf] }
  0x14   :  { %v48_v22 = vrot.slane %v47_v20, 1  ;;  %v448_v19 = vor.u32 %v469_v18, %v447_v17 }
  0x15   :  { %v57_v23 = vrot.slane %v56_v21, 1 }
  0x16   :  { %v49_v24 = vadd.f32 %v48_v22, %v47_v20  ;;  %226 = vmatpush.bf16.msra.mxu3 %v448_v19  ;;  %v443_v20 = vld [vmem:[#allocation2 + $0x8] sm:$0xf] }
  0x17   :  { %v58_v25 = vadd.f32 %v57_v23, %v56_v21  ;;  %v468_v21 = vld [vmem:[#allocation2 + $0x18] sm:$0xf0]  ;;  %v163_v23 = vld [vmem:[#allocation2 + $0x2c] sm:$0x1] }
  0x18   :  { %v59_v26 = vmul.f32 0.0625, %v49_v24  ;;  %v444_v22 = vor.u32 %v468_v21, %v443_v20  ;;  %v164_v24 = vunpack.c.l.bf16 %v163_v23 }
  0x19   :  { %v60_v27 = vmul.f32 0.0625, %v58_v25 }
  0x1a   :  { %v67_v28 = vpack.c.bf16 %v59_v26, %v59_v26  ;;  %227 = vmatpush.bf16.msra.mxu3 %v444_v22  ;;  %v166_v25 = vperm.slane %v164_v24, 0 }
  0x1b   :  { %v68_v29 = vpack.c.bf16 %v60_v27, %v60_v27 }
  0x1c   :  { %v72_v30 = vunpack.c.l.b16 %v67_v28 }
  0x1d   :  { %v73_v31 = vunpack.c.l.b16 %v68_v29 }
  0x1e   :  { %345 = vmatpush.bf16.msrb.mxu3 %v282_v62 }
  0x1f   :  { %v75_v32 = vsel %vm74_vm1, %v73_v31, %v72_v30  ;;  %vm395_vm1 = vcmask 56320  }
  0x20   :  { %v76_v33 = vpack.c.b16 %v75_v32, %v75_v32 }
  0x22   :  { %425 = vmatmul.msk.bf16.vlgmr.msra.gmra.mxu0 %vm40_vm0, %v76_v33 }
  0x9f   :  { %v101_v43 = vpop.f32.mrf.mxu0 }
  0xa0   :  { %v102_v44 = vadd.f32 %v101_v43, %v69_v42 }
  0xa2   :  { %v598_v45 = vmax.f32 %v102_v44, 0.0 }
  0xa4   :  { %v112_v46 = vpack.c.bf16 %v598_v45, %v598_v45 }
  0xa6   :  { %434 = vmatmul.msk.bf16.vlgmr.msra.gmra.mxu1 %vm40_vm0, %v112_v46 }
  0xa7   :  { %v103_v47 = vpop.f32.mrf.mxu0 }
 0x123   :  { %v138_v60 = vpop.f32.mrf.mxu1 }
 0x124   :  { %v139_v61 = vadd.f32 %v138_v60, %v113_v56  ;;  %v316_v56 = vsel %vm280_vm3, %v269_v54, 0 }
 0x125   :  { %325 = vmatpush.bf16.msrb.mxu1 %v316_v56 }
 0x126   :  { %v435_v63 = vmul.f32 -1.442695, %v139_v61  ;;  %v268_v61 = vcvt.s32.f32 %v603_v55 }
 0x128   :  { %489 = vpow2.f32 %v435_v63 }
 0x12b   :  { %v140_v0 = vpop.f32.mrf.mxu1 }
 0x12e   :  { %v490_v1 = vpop.eup %489 }
 0x12f   :  { %v145_v2 = vadd.f32 1.0, %v490_v1 }
 0x131   :  { %491 = vrcp.f32 %v145_v2  ;;  %v157_v6 = vand.u32 2147483648, %v145_v2  ;;  %v155_v8 = vand.u32 2147483647, %v145_v2  ;;  %vm151_vm5 = vweird.f32 %v145_v2 }
 0x133   :  { %v158_v10 = vor.u32 1.1754944e-38, %v157_v6  ;;  %vm156_vm7 = vcmp.eq.f32.partialorder %v155_v8, 8.507059e+37 }
 0x137   :  { %v492_v3 = vpop.eup %491 }
 0x138   :  { %v147_v4 = vmul.f32 %v492_v3, %v145_v2  ;;  %vm152_vm4 = vweird.f32 %v492_v3 }
 0x139   :  { %vm153_vm6 = vmor %vm151_vm5, %vm152_vm4 }
 0x13a   :  { %v148_v5 = vsub.f32 1.0, %v147_v4 }
 0x13c   :  { %v149_v7 = vmul.f32 %v492_v3, %v148_v5 }
 0x13e   :  { %v150_v9 = vadd.f32 %v492_v3, %v149_v7 }
 0x140   :  { %v154_v11 = vsel %vm153_vm6, %v492_v3, %v150_v9 }
 0x141   :  { %v608_v12 = vsel %vm156_vm7, %v158_v10, %v154_v11 }
 0x142   :  { %v165_v13 = vpack.c.bf16 %v608_v12, %v608_v12  ;;  %vm271_vm9 = vcmp.gt.f32.partialorder %v608_v12, 0.5 }
 0x143   :  { %v452_v14 = vsel %vm271_vm9, 1.0, %v548_v57 }
 0x144   :  { %440 = vmatmul.msk.bf16.vlgmr.msra.gmra.mxu2 %vm173_vm8, %v165_v13  ;;  %v274_v15 = vsub.f32 1.0, %v452_v14 }
 0x146   :  { %v275_v16 = vpack.c.bf16 %v274_v15, %v274_v15 }
 0x148   :  { %333 = vrot.lane.b32.xlu0 %v275_v16, %s549_s1  ;;  %453 = vmatmul.msk.bf16.vlgmr.msrb.gmra.mxu0 %vm276_vm10, %v275_v16 }
 0x150   :  { %236 = vrot.lane.b32.xlu0 %v448_v19, %s550_s27 }
 0x158   :  { %241 = vrot.lane.b32.xlu0 %v204_v38, %s550_s27 }
 0x1ba   :  { %v334_v34 = vpop.permute.xlu0 %333 }
 0x1c2   :  { %v237_v35 = vpop.permute.xlu0 %236 }
 0x1c3   :  { %253 = vmatpush.bf16.msrb.mxu2 %v237_v35 }
 0x1c5   :  { %v293_v26 = vpop.f32.mrf.mxu0 }
 0x1c6   :  { %vm297_vm13 = vcmp.lt.f32.partialorder %v293_v26, 0.5 }
 0x1c7   :  { %v186_v27 = vpop.f32.mrf.mxu2  ;;  %v454_v50 = vsel %vm297_vm13, 1.0, %v548_v57 }
 0x1c8   :  { %v187_v28 = vadd.f32 %v186_v27, %v166_v25  ;;  %v301_v51 = vsel %vm300_vm12, %v454_v50, 0.0 }
 0x1ca   :  { %v190_v29 = vmax.f32 %v187_v28, 0.0  ;;  %v242_v55 = vpop.permute.xlu0 %241 }
 0x1cc   :  { %v191_v30 = vadd.f32 %v190_v29, %v598_v45  ;;  %193 = vrot.lane.b32.xlu1 %v190_v29, %s551_s28 }
 0x1cd   :  { %v295_v31 = vpop.f32.mrf.mxu0 }
 0x1ce   :  { %v203_v32 = vpack.c.bf16 %v191_v30, %v191_v30 }
 0x1cf   :  { %v188_v33 = vpop.f32.mrf.mxu2 }
 0x1d0   :  { %449 = vmatmul.msk.bf16.vlgmr.msra.gmra.mxu3 %vm40_vm0, %v203_v32 }
 0x1d4   :  { %234 = vrot.lane.b32.xlu1 %v444_v22, %s550_s27 }
 0x1e0   :  { %458 = vmatmul.msk.bf16.vlgmr.msrb.gmra.mxu3 %vm276_vm10, %v334_v34 }
 0x23e   :  { %v194_v39 = vpop.permute.xlu1 %193 }
 0x23f   :  { %v196_v40 = vadd.f32 %v194_v39, %v191_v30 }
 0x241   :  { %v233_v42 = vpack.c.bf16 %v196_v40, %v196_v40 }
 0x246   :  { %v235_v41 = vpop.permute.xlu1 %234 }
 0x247   :  { %254 = vmatpush.bf16.msrb.mxu2 %v235_v41 }
 0x24a   :  { %450 = vmatmul.msk.bf16.vlgmr.msrb.gmra.mxu2 %vm40_vm0, %v233_v42  ;;  %vm393_vm0 = vcmask 23552  }
 0x24b   :  { %378 = vmatpush.bf16.msra.mxu2 %v369_v53 }
 0x253   :  { %v229_v43 = vpop.f32.mrf.mxu3 }
 0x254   :  { %v230_v44 = vadd.f32 %v229_v43, %v204_v38 }
 0x25b   :  { %v231_v45 = vpop.f32.mrf.mxu3 }
 0x263   :  { %v347_v46 = vpop.f32.mrf.mxu3 }
 0x264   :  { %vm351_vm11 = vcmp.lt.f32.partialorder %v347_v46, 0.5 }
 0x265   :  { %v459_v47 = vsel %vm351_vm11, 1.0, %v548_v57 }
 0x266   :  { %v354_v48 = vsel %vm300_vm12, %v459_v47, 0.0 }
 0x267   :  { %355 = vadd.xlane.f32.xlu2 %v354_v48 }
 0x26b   :  { %v349_v49 = vpop.f32.mrf.mxu3 }
 0x26f   :  { %302 = vadd.xlane.f32.xlu2 %v301_v51 }
 0x287   :  { %390 = vrot.lane.b32.xlu2 %v608_v12, %s552_s29 }
 0x2cd   :  { %v256_v58 = vpop.f32.mrf.mxu2 }
 0x2ce   :  { %v257_v11 = vadd.f32 %v256_v58, %v242_v55 }
 0x2d5   :  { %v258_v59 = vpop.f32.mrf.mxu2 }
 0x2da   :  { %v356_v60 = vpop.xlane.xlu2 %355 }
 0x2db   :  { %v460_v62 = vadd.f32 -1.0, %v356_v60 }
 0x2dd   :  { %v358_v63 = vmax.f32 %v460_v62, 0.0 }
 0x2df   :  { %v359_v0 = vsub.f32 %v358_v63, %v268_v61 }
 0x2e1   :  { %v360_v1 = vand.u32 2147483647, %v359_v0 }
 0x2e2   :  { %v303_v2 = vpop.xlane.xlu2 %302 }
 0x2e3   :  { %vm361_vm14 = vcmp.lt.f32.partialorder %v360_v1, 0.5  ;;  %v455_v3 = vadd.f32 -1.0, %v303_v2 }
 0x2e4   :  { %v461_v4 = vsel %vm361_vm14, 1.0, %v548_v57 }
 0x2e5   :  { %v364_v5 = vpack.c.bf16 %v461_v4, %v461_v4  ;;  %v305_v6 = vmax.f32 %v455_v3, 0.0 }
 0x2e7   :  { %v306_v7 = vsub.f32 %v305_v6, %v268_v61  ;;  %462 = vmatmul.msk.bf16.vlgmr.msra.gmra.mxu2 %vm276_vm10, %v364_v5 }
 0x2e9   :  { %v307_v8 = vand.u32 2147483647, %v306_v7 }
 0x2ea   :  { %v391_v18 = vpop.permute.xlu2 %390 }
 0x2eb   :  { %vm308_vm15 = vcmp.lt.f32.partialorder %v307_v8, 0.5 }
 0x2ec   :  { %v456_v9 = vsel %vm308_vm15, 1.0, %v548_v57 }
 0x2ed   :  { %v311_v10 = vpack.c.bf16 %v456_v9, %v456_v9 }
 0x2ef   :  { %457 = vmatmul.msk.bf16.vlgmr.msrb.gmra.mxu1 %vm276_vm10, %v311_v10 }
 0x36a   :  { %v380_v12 = vpop.f32.mrf.mxu2 }
 0x36b   :  { %v384_v13 = vadd.f32 %v380_v12, %v257_v11 }
 0x36c   :  { %v327_v14 = vpop.f32.mrf.mxu1 }
 0x36d   :  { %v331_v15 = vadd.f32 %v327_v14, %v230_v44  ;;  %386 = vrot.lane.b32.xlu1 %v384_v13, %s553_s30 }
 0x372   :  { %v382_v16 = vpop.f32.mrf.mxu2 }
 0x374   :  { %v329_v17 = vpop.f32.mrf.mxu1 }
 0x3df   :  { %v387_v57 = vpop.permute.xlu1 %386 }
 0x3e0   :  { %v394_v19 = vsel %vm393_vm0, %v331_v15, %v387_v57 }
 0x3e1   :  { %v396_v20 = vsel %vm395_vm1, %v394_v19, %v391_v18 }
 0x3e2   :  { %v398_v21 = vsel %vm397_vm2, %v396_v20, 0.0 }
 0x3e3   :  { %399 = vst [vmem:[#allocation5] sm:$0x3] %v398_v21 }
 0x3e4   :  { %410 = dma.vmem_to_hbm [thread:$0]  %s406_s5, 32, %s408_s8, [#allocation4]  }
 0x3e5   :  { %543 = dma.done.wait [#allocation4], 32  }
 0x3e6   :  { %544 = vsyncadd [#allocation4], 4294967264 }
 0x3e7   :  { %415 = vsyncpa [#allocation3], 1 }
 0x3e8   :  { %416 = vsyncpa [#allocation4], 1 }

</bundles_post_ra>
